<compile_context>
chip_gen: v6e
topology: v6e:2x2x1
jax: 0.10.0
libtpu: 0.0.40
codegen_flags: <defaults>
</compile_context>

<pallas_src>
import functools

import jax
import jax.numpy as jnp
from jax.experimental import pallas as pl
from jax.experimental.pallas import tpu as pltpu


def _round_up(x, m):
    return ((x + m - 1) // m) * m


def _vfe_kernel(occ_ref, idx_ref, feat_ref, out_ref, cnt_ref, *, tile_v):
    vi = pl.program_id(0)   # voxel tile (parallel)
    ni = pl.program_id(1)   # point tile (reduction, last grid axis)

    @pl.when(ni == 0)
    def _():
        out_ref[...] = jnp.zeros_like(out_ref)
        cnt_ref[...] = jnp.zeros_like(cnt_ref)

    # Skip compare + matmul entirely for point tiles with no point in this voxel tile.
    @pl.when(occ_ref[vi, ni] != 0)
    def _():
        idx_col = idx_ref[...]                                       # (tile_n, 1) int32
        vid_row = vi * tile_v + jax.lax.broadcasted_iota(
            jnp.int32, (1, tile_v), 1)                               # (1, tile_v)
        # index == -1 (invalid / padded) never equals a voxel id >= 0 -> zero column.
        match = idx_col == vid_row                                   # (tile_n, tile_v)

        onehot = match.astype(feat_ref.dtype)
        # (C_pad, tile_n) @ (tile_n, tile_v) -> (C_pad, tile_v) on the MXU.
        out_ref[...] += jnp.dot(feat_ref[...], onehot,
                                preferred_element_type=jnp.float32)
        # Per-voxel counts: sublane (XLU) reduce of the one-hot, exact in f32.
        cnt_ref[0:1, :] += jnp.sum(match.astype(jnp.float32), axis=0, keepdims=True)

    @pl.when(ni == pl.num_programs(1) - 1)
    def _():
        cnt = jnp.maximum(cnt_ref[0:1, :], 1.0)                      # empty voxels -> 0
        out_ref[...] = (out_ref[...] / cnt).astype(out_ref.dtype)


def vfe_scatter_mean(features, index, num_voxels, *, tile_v=2048, tile_n=512,
                     use_bf16=False):
    """features: (N, C) float, index: (N,) int32 with -1 = invalid.
    Returns (num_voxels, C) float32 scatter-mean (empty voxels -> 0).
    Requires index < num_voxels for valid points."""
    n, c = features.shape

    # ---- tile selection ---------------------------------------------------
    c_pad = _round_up(c, 8)                         # channel rows (sublane-aligned)
    v_needed = _round_up(max(num_voxels, 1), 128)   # voxel axis, lane-aligned
    tile_v = max(128, min(tile_v, v_needed))
    # v7x megacore: prefer >= 2 "parallel" voxel tiles when the axis is big enough
    # (single-TC chips pay a little extra feature re-streaming; only split when
    # each tile stays >= 512 lanes wide).
    if v_needed >= 1024 and v_needed // tile_v < 2:
        tile_v = _round_up(-(-v_needed // 2), 128)
    v_pad = _round_up(v_needed, tile_v)

    tile_n = max(128, min(tile_n, _round_up(max(n, 1), 128)))
    n_pad = _round_up(max(n, 1), tile_n)

    num_v_tiles = v_pad // tile_v
    num_n_tiles = n_pad // tile_n

    # ---- host-side input prep ---------------------------------------------
    feat_dtype = jnp.bfloat16 if use_bf16 else jnp.float32
    feat_t = jnp.zeros((c_pad, n_pad), feat_dtype)
    feat_t = feat_t.at[:c, :n].set(features.astype(feat_dtype).T)

    idx32 = index.astype(jnp.int32)
    idx_p = jnp.full((n_pad, 1), -1, jnp.int32).at[:n, 0].set(idx32)

    # Occupancy bitmap: occ[vi, ni] = 1 iff point tile ni holds any valid point
    # whose voxel id falls inside voxel tile vi.  Prefetched into SMEM.
    point_tile = jnp.arange(n, dtype=jnp.int32) // tile_n
    valid = (idx32 >= 0).astype(jnp.int32)
    vox_tile = jnp.clip(idx32 // tile_v, 0, num_v_tiles - 1)
    flat = vox_tile * num_n_tiles + point_tile
    occ = (jnp.zeros((num_v_tiles * num_n_tiles,), jnp.int32)
           .at[flat].max(valid)
           .reshape(num_v_tiles, num_n_tiles))

    # ---- kernel launch -----------------------------------------------------
    kernel = functools.partial(_vfe_kernel, tile_v=tile_v)
    out_t = pl.pallas_call(
        kernel,
        out_shape=jax.ShapeDtypeStruct((c_pad, v_pad), jnp.float32),
        grid_spec=pltpu.PrefetchScalarGridSpec(
            num_scalar_prefetch=1,                      # occupancy bitmap -> SMEM
            grid=(num_v_tiles, num_n_tiles),
            in_specs=[
                pl.BlockSpec((tile_n, 1), lambda vi, ni, occ: (ni, 0)),      # idx col
                pl.BlockSpec((c_pad, tile_n), lambda vi, ni, occ: (0, ni)),  # feat_T
            ],
            # Ignores ni -> resident accumulator across the reduction axis.
            out_specs=pl.BlockSpec((c_pad, tile_v), lambda vi, ni, occ: (0, vi)),
            scratch_shapes=[pltpu.VMEM((8, tile_v), jnp.float32)],           # counts
        ),
        compiler_params=pltpu.CompilerParams(
            dimension_semantics=("parallel", "arbitrary")),
    )(occ, idx_p, feat_t)

    # Drop padded channel rows / padded voxel columns; back to (num_voxels, C).
    return out_t[:c, :num_voxels].T


def _reference(features, index, num_voxels):
    mask = index != -1
    idx = jnp.where(mask, index, 0)
    w = mask.astype(jnp.float32)
    sums = jax.ops.segment_sum(features * w[:, None], idx, num_segments=num_voxels)
    cnts = jax.ops.segment_sum(w, idx, num_segments=num_voxels)
    return sums / jnp.maximum(cnts, 1.0)[:, None]


if __name__ == "__main__":
    key = jax.random.PRNGKey(0)
    k_feat, k_idx, k_mask = jax.random.split(key, 3)

    N = 200                 # number of points
    C = 32                  # voxel_feature_channel
    NUM_VOXELS = 48

    features = jax.random.normal(k_feat, (N, C), dtype=jnp.float32)
    index = jax.random.randint(k_idx, (N,), 0, NUM_VOXELS, dtype=jnp.int32)
    # mark ~20% of points as invalid (index == -1), as the module expects
    invalid = jax.random.bernoulli(k_mask, 0.2, (N,))
    index = jnp.where(invalid, -1, index)

    ref = _reference(features, index, NUM_VOXELS)

    # f32 path (default): exact match vs the f32 reference.
    out = jax.block_until_ready(vfe_scatter_mean(features, index, NUM_VOXELS))
    assert out.shape == (NUM_VOXELS, C)
    assert jnp.allclose(out, ref, atol=1e-5, rtol=1e-5), "f32 mismatch vs reference"

    # bf16 MXU fast path (gated): looser tolerance (feature mantissa rounding).
    out_bf16 = jax.block_until_ready(
        vfe_scatter_mean(features, index, NUM_VOXELS, use_bf16=True))
    assert out_bf16.shape == (NUM_VOXELS, C)
    assert jnp.allclose(out_bf16, ref, atol=1e-1, rtol=1e-1), "bf16 mismatch vs reference"

    print("KERNEL_OK")
</pallas_src>

<mosaic_0001>
module attributes {stable_mosaic.version = 11 : i64} {
  func.func @_vfe_kernel(%arg0: i32, %arg1: i32, %arg2: memref<1x1xi32, #tpu.memory_space<smem>>, %arg3: memref<256x1xi32, #tpu.memory_space<vmem>>, %arg4: memref<32x256xf32, #tpu.memory_space<vmem>>, %arg5: memref<32x128xf32, #tpu.memory_space<vmem>>, %arg6: memref<8x128xf32, #tpu.memory_space<vmem>>) attributes {dimension_semantics = [#tpu.dimension_semantics<parallel>, #tpu.dimension_semantics<arbitrary>], iteration_bounds = array<i64: 1, 1>, scalar_prefetch = 1 : i64, scratch_operands = 1 : i64, tpu.core_type = #tpu.core_type<tc>, window_params = [{transform_indices = @transform_0, window_bounds = array<i64: 256, 1>}, {transform_indices = @transform_1, window_bounds = array<i64: 32, 256>}, {transform_indices = @transform_2, window_bounds = array<i64: 32, 128>}]} {
    %c0_i32 = arith.constant 0 : i32
    %0 = arith.cmpi eq, %arg1, %c0_i32 : i32
    %1 = arith.extui %0 : i1 to i32
    %c0_i32_0 = arith.constant 0 : i32
    %2 = arith.cmpi ne, %1, %c0_i32_0 : i32
    scf.if %2 {
      %cst = arith.constant 0.000000e+00 : f32
      %12 = vector.broadcast %cst : f32 to vector<32x128xf32>
      %c0 = arith.constant 0 : index
      %c0_5 = arith.constant 0 : index
      %13 = vector.load %arg5[%c0, %c0_5] : memref<32x128xf32, #tpu.memory_space<vmem>>, vector<32x128xf32>
      tpu.vector_store %arg5[%c0, %c0_5], %12 {strides = array<i32>} : memref<32x128xf32, #tpu.memory_space<vmem>>, vector<32x128xf32>,
      %cst_6 = arith.constant 0.000000e+00 : f32
      %14 = vector.broadcast %cst_6 : f32 to vector<8x128xf32>
      %c0_7 = arith.constant 0 : index
      %c0_8 = arith.constant 0 : index
      %15 = vector.load %arg6[%c0_7, %c0_8] : memref<8x128xf32, #tpu.memory_space<vmem>>, vector<8x128xf32>
      tpu.vector_store %arg6[%c0_7, %c0_8], %14 {strides = array<i32>} : memref<8x128xf32, #tpu.memory_space<vmem>>, vector<8x128xf32>,
    } else {
    }
    %3 = arith.index_cast %arg0 : i32 to index
    %4 = arith.index_cast %arg1 : i32 to index
    %5 = memref.load %arg2[%3, %4] : memref<1x1xi32, #tpu.memory_space<smem>>
    %c0_i32_1 = arith.constant 0 : i32
    %6 = arith.cmpi ne, %5, %c0_i32_1 : i32
    %7 = arith.extui %6 : i1 to i32
    %c0_i32_2 = arith.constant 0 : i32
    %8 = arith.cmpi ne, %7, %c0_i32_2 : i32
    scf.if %8 {
      %c0 = arith.constant 0 : index
      %c0_5 = arith.constant 0 : index
      %12 = vector.load %arg3[%c0, %c0_5] : memref<256x1xi32, #tpu.memory_space<vmem>>, vector<256x1xi32>
      %c128_i32 = arith.constant 128 : i32
      %13 = arith.muli %arg0, %c128_i32 : i32
      %14 = tpu.iota {dimensions = array<i32: 1>} : vector<1x128xi32>
      %15 = vector.broadcast %13 : i32 to vector<1x128xi32>
      %16 = arith.addi %15, %14 : vector<1x128xi32>
      %17 = vector.broadcast %12 : vector<256x1xi32> to vector<256x128xi32>
      %18 = vector.broadcast %16 : vector<1x128xi32> to vector<256x128xi32>
      %19 = arith.cmpi eq, %17, %18 : vector<256x128xi32>
      %20 = arith.extui %19 : vector<256x128xi1> to vector<256x128xi32>
      %21 = arith.sitofp %20 : vector<256x128xi32> to vector<256x128xf32>
      %c0_6 = arith.constant 0 : index
      %c0_7 = arith.constant 0 : index
      %22 = vector.load %arg5[%c0_6, %c0_7] : memref<32x128xf32, #tpu.memory_space<vmem>>, vector<32x128xf32>
      %c0_8 = arith.constant 0 : index
      %c0_9 = arith.constant 0 : index
      %23 = vector.load %arg4[%c0_8, %c0_9] : memref<32x256xf32, #tpu.memory_space<vmem>>, vector<32x256xf32>
      %cst = arith.constant dense<0.000000e+00> : vector<32x128xf32>
      %24 = tpu.matmul %23, %21, %cst {dimension_numbers = #tpu.dot_dimension_numbers<[1], [0], [0], [1], [0, 0, 1, 1], [], []>} : vector<32x256xf32>, vector<256x128xf32>, vector<32x128xf32> -> vector<32x128xf32>
      %25 = arith.addf %22, %24 : vector<32x128xf32>
      %c0_10 = arith.constant 0 : index
      %c0_11 = arith.constant 0 : index
      %26 = vector.load %arg5[%c0_10, %c0_11] : memref<32x128xf32, #tpu.memory_space<vmem>>, vector<32x128xf32>
      tpu.vector_store %arg5[%c0_10, %c0_11], %25 {strides = array<i32>} : memref<32x128xf32, #tpu.memory_space<vmem>>, vector<32x128xf32>,
      %c0_12 = arith.constant 0 : index
      %c0_13 = arith.constant 0 : index
      %27 = vector.load %arg6[%c0_12, %c0_13] : memref<8x128xf32, #tpu.memory_space<vmem>>, vector<1x128xf32>
      %28 = arith.extui %19 : vector<256x128xi1> to vector<256x128xi32>
      %29 = arith.sitofp %28 : vector<256x128xi32> to vector<256x128xf32>
      %cst_14 = arith.constant dense<0.000000e+00> : vector<128xf32>
      %30 = vector.multi_reduction <add>, %29, %cst_14 [0] : vector<256x128xf32> to vector<128xf32>
      %31 = vector.shape_cast %30 : vector<128xf32> to vector<1x128xf32>
      %32 = arith.addf %27, %31 : vector<1x128xf32>
      %c0_15 = arith.constant 0 : index
      %c0_16 = arith.constant 0 : index
      %33 = vector.load %arg6[%c0_15, %c0_16] : memref<8x128xf32, #tpu.memory_space<vmem>>, vector<1x128xf32>
      tpu.vector_store %arg6[%c0_15, %c0_16], %32 {strides = array<i32>} : memref<8x128xf32, #tpu.memory_space<vmem>>, vector<1x128xf32>,
    } else {
    }
    %c0_i32_3 = arith.constant 0 : i32
    %9 = arith.cmpi eq, %arg1, %c0_i32_3 : i32
    %10 = arith.extui %9 : i1 to i32
    %c0_i32_4 = arith.constant 0 : i32
    %11 = arith.cmpi ne, %10, %c0_i32_4 : i32
    scf.if %11 {
      %c0 = arith.constant 0 : index
      %c0_5 = arith.constant 0 : index
      %12 = vector.load %arg6[%c0, %c0_5] : memref<8x128xf32, #tpu.memory_space<vmem>>, vector<1x128xf32>
      %cst = arith.constant 1.000000e+00 : f32
      %13 = vector.broadcast %cst : f32 to vector<1x128xf32>
      %14 = arith.maximumf %12, %13 : vector<1x128xf32>
      %c0_6 = arith.constant 0 : index
      %c0_7 = arith.constant 0 : index
      %15 = vector.load %arg5[%c0_6, %c0_7] : memref<32x128xf32, #tpu.memory_space<vmem>>, vector<32x128xf32>
      %16 = vector.broadcast %14 : vector<1x128xf32> to vector<32x128xf32>
      %17 = arith.divf %15, %16 : vector<32x128xf32>
      %c0_8 = arith.constant 0 : index
      %c0_9 = arith.constant 0 : index
      %18 = vector.load %arg5[%c0_8, %c0_9] : memref<32x128xf32, #tpu.memory_space<vmem>>, vector<32x128xf32>
      tpu.vector_store %arg5[%c0_8, %c0_9], %17 {strides = array<i32>} : memref<32x128xf32, #tpu.memory_space<vmem>>, vector<32x128xf32>,
    } else {
    }
    return
  }
  func.func @transform_0(%arg0: i32, %arg1: i32, %arg2: memref<1x1xi32, #tpu.memory_space<smem>>) -> (i32, i32) {
    %c0_i32 = arith.constant 0 : i32
    %c0_i32_0 = arith.constant 0 : i32
    return %arg1, %c0_i32 : i32, i32
  }
  func.func @transform_1(%arg0: i32, %arg1: i32, %arg2: memref<1x1xi32, #tpu.memory_space<smem>>) -> (i32, i32) {
    %c0_i32 = arith.constant 0 : i32
    %c0_i32_0 = arith.constant 0 : i32
    return %c0_i32, %arg1 : i32, i32
  }
  func.func @transform_2(%arg0: i32, %arg1: i32, %arg2: memref<1x1xi32, #tpu.memory_space<smem>>) -> (i32, i32) {
    %c0_i32 = arith.constant 0 : i32
    %c0_i32_0 = arith.constant 0 : i32
    return %c0_i32, %arg0 : i32, i32
  }
}

</mosaic_0001>

<bundles_post_ra>
// kernel: tpu_custom_call.1
= control target key start
LH: loop header
LB: loop body
LE: loop exit
PB: predicated region body
PF: predicated region fallthrough
CT: control target
= control target key end

     0   :  { %9 = vsyncpa [#allocation6], 0  ;;  %v617_v0 = vmov 0.0   ;;  %s1236_s0 = inlined_call_operand.<no memory space> [shape: s32[1,1], index: 0, kind: input, shape index: {}]   ;;  %s1237_s1 = inlined_call_operand.vmem [shape: s32[256,1], index: 1, kind: input, shape index: {}]   ;;  %s1238_s2 = inlined_call_operand.vmem [shape: f32[32,256], index: 2, kind: input, shape index: {}]   ;;  %s1239_s3 = inlined_call_operand.hbm [shape: f32[32,128], index: 3, kind: output, shape index: {}]  }
   0x1   :  { %18 = vst [vmem:[#allocation5] sm:$0xff] %v617_v0  ;;  %19 = vst [vmem:[#allocation5 + $0x8] sm:$0xff] %v617_v0  ;;  %p443_p0 = scmp.eq.s32.totalorder %s1236_s0, 0 }
   0x2   :  { %20 = vst [vmem:[#allocation5 + $0x10] sm:$0xff] %v617_v0  ;;  %21 = vst [vmem:[#allocation5 + $0x18] sm:$0xff] %v617_v0 }
   0x3   :  { %22 = vst [vmem:[#allocation2] sm:$0xff] %v617_v0  ;;  %30 = sbr.rel (%p443_p0) target bundleno = 401 (0x191), region = 17 }
   0x8   :  { %v62_v1 = vld [vmem:[%s1237_s1 + $0xf8] sm:$0xff]  ;;  %v61_v2 = vld [vmem:[%s1237_s1 + $0xf0] sm:$0xff]  ;;  %v618_v3 = vmov 0   ;;  %v60_v6 = vld [vmem:[%s1237_s1 + $0xe8] sm:$0xff]  ;;  %v64_v36 = vlaneseq  ;;  %v619_v40 = vmov 1.0  }
   0x9   :  { %592 = vset.pattern.permute.xlu1 %v618_v3  ;;  %591 = vset.pattern.permute.xlu0 %v618_v3  ;;  %v46_v4 = vld [vmem:[%s1237_s1 + $0x78] sm:$0xff]  ;;  %v45_v5 = vld [vmem:[%s1237_s1 + $0x70] sm:$0xff]  ;;  %v44_v7 = vld [vmem:[%s1237_s1 + $0x68] sm:$0xff] }
   0xa   :  { %162 = vperm.xlu0 %591, %v62_v1   ;;  %159 = vperm.xlu1 %592, %v61_v2   ;;  %v59_v8 = vld [vmem:[%s1237_s1 + $0xe0] sm:$0xff]  ;;  %v58_v10 = vld [vmem:[%s1237_s1 + $0xd8] sm:$0xff]  ;;  %v57_v12 = vld [vmem:[%s1237_s1 + $0xd0] sm:$0xff]  ;;  %v749_v37 = vand.u32 127, %v64_v36 }
   0xb   :  { %v43_v9 = vld [vmem:[%s1237_s1 + $0x60] sm:$0xff]  ;;  %v42_v11 = vld [vmem:[%s1237_s1 + $0x58] sm:$0xff]  ;;  %v41_v13 = vld [vmem:[%s1237_s1 + $0x50] sm:$0xff] }
   0xc   :  { %v56_v14 = vld [vmem:[%s1237_s1 + $0xc8] sm:$0xff]  ;;  %v55_v16 = vld [vmem:[%s1237_s1 + $0xc0] sm:$0xff]  ;;  %v54_v18 = vld [vmem:[%s1237_s1 + $0xb8] sm:$0xff] }
   0xd   :  { %v40_v15 = vld [vmem:[%s1237_s1 + $0x48] sm:$0xff]  ;;  %v39_v17 = vld [vmem:[%s1237_s1 + $0x40] sm:$0xff]  ;;  %v38_v19 = vld [vmem:[%s1237_s1 + $0x38] sm:$0xff] }
   0xe   :  { %114 = vperm.xlu0 %591, %v46_v4   ;;  %111 = vperm.xlu1 %592, %v45_v5   ;;  %v53_v20 = vld [vmem:[%s1237_s1 + $0xb0] sm:$0xff]  ;;  %v52_v22 = vld [vmem:[%s1237_s1 + $0xa8] sm:$0xff]  ;;  %v51_v24 = vld [vmem:[%s1237_s1 + $0xa0] sm:$0xff] }
   0xf   :  { %v37_v21 = vld [vmem:[%s1237_s1 + $0x30] sm:$0xff]  ;;  %v36_v23 = vld [vmem:[%s1237_s1 + $0x28] sm:$0xff]  ;;  %v35_v25 = vld [vmem:[%s1237_s1 + $0x20] sm:$0xff] }
  0x10   :  { %v50_v26 = vld [vmem:[%s1237_s1 + $0x98] sm:$0xff]  ;;  %v49_v28 = vld [vmem:[%s1237_s1 + $0x90] sm:$0xff]  ;;  %v48_v30 = vld [vmem:[%s1237_s1 + $0x88] sm:$0xff] }
  0x11   :  { %v34_v27 = vld [vmem:[%s1237_s1 + $0x18] sm:$0xff]  ;;  %v33_v29 = vld [vmem:[%s1237_s1 + $0x10] sm:$0xff]  ;;  %v32_v31 = vld [vmem:[%s1237_s1 + $0x8] sm:$0xff] }
  0x12   :  { %156 = vperm.xlu0 %591, %v60_v6   ;;  %108 = vperm.xlu1 %592, %v44_v7   ;;  %v47_v32 = vld [vmem:[%s1237_s1 + $0x80] sm:$0xff]  ;;  %v265_v34 = vld [vmem:[%s1238_s2 + $0x8] sm:$0xff] }
  0x13   :  { %v31_v33 = vld [vmem:[%s1237_s1] sm:$0xff]  ;;  %v269_v35 = vld [vmem:[%s1238_s2 + $0x28] sm:$0xff]  ;;  %336 = vmatprep.mubr.f32.mxu0 %v265_v34 }
  0x14   :  { %346 = vmatprep.mubr.f32.mxu1 %v269_v35  ;;  %v264_v7 = vld [vmem:[%s1238_s2] sm:$0xff] }
  0x16   :  { %153 = vperm.xlu0 %591, %v59_v8   ;;  %105 = vperm.xlu1 %592, %v43_v9   ;;  %v268_v8 = vld [vmem:[%s1238_s2 + $0x20] sm:$0xff]  ;;  %v620_v9 = vmov 0.0  }
  0x1a   :  { %150 = vperm.xlu0 %591, %v58_v10   ;;  %102 = vperm.xlu1 %592, %v42_v11  }
  0x1e   :  { %147 = vperm.xlu0 %591, %v57_v12   ;;  %99 = vperm.xlu1 %592, %v41_v13   ;;  %v267_v12 = vld [vmem:[%s1238_s2 + $0x18] sm:$0xff] }
  0x1f   :  { %v271_v13 = vld [vmem:[%s1238_s2 + $0x38] sm:$0xff] }
  0x22   :  { %144 = vperm.xlu0 %591, %v56_v14   ;;  %96 = vperm.xlu1 %592, %v40_v15  }
  0x26   :  { %141 = vperm.xlu0 %591, %v55_v16   ;;  %93 = vperm.xlu1 %592, %v39_v17   ;;  %v266_v17 = vld [vmem:[%s1238_s2 + $0x10] sm:$0xff] }
  0x2a   :  { %138 = vperm.xlu0 %591, %v54_v18   ;;  %90 = vperm.xlu1 %592, %v38_v19   ;;  %v270_v18 = vld [vmem:[%s1238_s2 + $0x30] sm:$0xff] }
  0x2e   :  { %135 = vperm.xlu0 %591, %v53_v20   ;;  %87 = vperm.xlu1 %592, %v37_v21  }
  0x32   :  { %132 = vperm.xlu0 %591, %v52_v22   ;;  %84 = vperm.xlu1 %592, %v36_v23  }
  0x36   :  { %129 = vperm.xlu0 %591, %v51_v24   ;;  %81 = vperm.xlu1 %592, %v35_v25  }
  0x3a   :  { %126 = vperm.xlu0 %591, %v50_v26   ;;  %78 = vperm.xlu1 %592, %v34_v27  }
  0x3e   :  { %123 = vperm.xlu0 %591, %v49_v28   ;;  %75 = vperm.xlu1 %592, %v33_v29  }
  0x42   :  { %120 = vperm.xlu0 %591, %v48_v30   ;;  %72 = vperm.xlu1 %592, %v32_v31  }
  0x46   :  { %117 = vperm.xlu0 %591, %v47_v32   ;;  %69 = vperm.xlu1 %592, %v31_v33  }
  0x85   :  { %v751_v38 = vpop.permute.xlu0 %162  ;;  %v753_v39 = vpop.permute.xlu1 %159 }
  0x86   :  { %vm1240_vm0 = vcmp.eq.s32.totalorder %v751_v38, %v749_v37  ;;  %vm1241_vm2 = vcmp.eq.s32.totalorder %v753_v39, %v749_v37 }
  0x87   :  { %508 = vmatprep.subr.msk.mxu0 %vm1240_vm0, %v619_v40  ;;  %552 = vmatprep.subr.msk.mxu1 %vm1240_vm0, %v619_v40 }
  0x89   :  { %v765_v41 = vpop.permute.xlu0 %114  ;;  %v767_v42 = vpop.permute.xlu1 %111 }
  0x8a   :  { %vm1253_vm1 = vcmp.eq.s32.totalorder %v765_v41, %v749_v37  ;;  %vm1255_vm3 = vcmp.eq.s32.totalorder %v767_v42, %v749_v37 }
  0x8b   :  { %509 = vmatpush3.msk.msra.mxu0 %vm1253_vm1, %v619_v40  ;;  %568 = vmatpush3.msk.msra.mxu1 %vm1253_vm1, %v619_v40 }
  0x8c   :  { %510 = vmatprep.subr.msk.mxu0 %vm1241_vm2, %v619_v40  ;;  %553 = vmatprep.subr.msk.mxu1 %vm1241_vm2, %v619_v40 }
  0x8d   :  { %v791_v43 = vpop.permute.xlu0 %156  ;;  %511 = vmatpush3.msk.msra.mxu0 %vm1255_vm3, %v619_v40  ;;  %569 = vmatpush3.msk.msra.mxu1 %vm1255_vm3, %v619_v40  ;;  %v801_v44 = vpop.permute.xlu1 %108 }
  0x8e   :  { %vm1242_vm4 = vcmp.eq.s32.totalorder %v791_v43, %v749_v37  ;;  %vm177_vm5 = vcmp.eq.s32.totalorder %v801_v44, %v749_v37 }
  0x8f   :  { %512 = vmatprep.subr.msk.mxu0 %vm1242_vm4, %v619_v40  ;;  %554 = vmatprep.subr.msk.mxu1 %vm1242_vm4, %v619_v40 }
  0x90   :  { %513 = vmatpush3.msk.msra.mxu0 %vm177_vm5, %v619_v40  ;;  %570 = vmatpush3.msk.msra.mxu1 %vm177_vm5, %v619_v40 }
  0x91   :  { %v823_v45 = vpop.permute.xlu0 %153  ;;  %v825_v46 = vpop.permute.xlu1 %105 }
  0x92   :  { %vm1243_vm6 = vcmp.eq.s32.totalorder %v823_v45, %v749_v37  ;;  %vm176_vm7 = vcmp.eq.s32.totalorder %v825_v46, %v749_v37 }
  0x93   :  { %514 = vmatprep.subr.msk.mxu0 %vm1243_vm6, %v619_v40  ;;  %555 = vmatprep.subr.msk.mxu1 %vm1243_vm6, %v619_v40 }
  0x94   :  { %515 = vmatpush3.msk.msra.mxu0 %vm176_vm7, %v619_v40  ;;  %571 = vmatpush3.msk.msra.mxu1 %vm176_vm7, %v619_v40 }
  0x95   :  { %v847_v47 = vpop.permute.xlu0 %150  ;;  %v849_v48 = vpop.permute.xlu1 %102 }
  0x96   :  { %vm1244_vm8 = vcmp.eq.s32.totalorder %v847_v47, %v749_v37  ;;  %vm175_vm9 = vcmp.eq.s32.totalorder %v849_v48, %v749_v37 }
  0x97   :  { %516 = vmatprep.subr.msk.mxu0 %vm1244_vm8, %v619_v40  ;;  %556 = vmatprep.subr.msk.mxu1 %vm1244_vm8, %v619_v40  ;;  %v455_v35 = vsel %vm175_vm9, 1.0, %v620_v9 }
  0x98   :  { %517 = vmatpush3.msk.msra.mxu0 %vm175_vm9, %v619_v40  ;;  %572 = vmatpush3.msk.msra.mxu1 %vm175_vm9, %v619_v40 }
  0x99   :  { %v871_v49 = vpop.permute.xlu0 %147  ;;  %v873_v50 = vpop.permute.xlu1 %99 }
  0x9a   :  { %vm1245_vm10 = vcmp.eq.s32.totalorder %v871_v49, %v749_v37  ;;  %vm174_vm11 = vcmp.eq.s32.totalorder %v873_v50, %v749_v37 }
  0x9b   :  { %518 = vmatprep.subr.msk.mxu0 %vm1245_vm10, %v619_v40  ;;  %557 = vmatprep.subr.msk.mxu1 %vm1245_vm10, %v619_v40  ;;  %v454_v33 = vsel %vm174_vm11, 1.0, %v620_v9 }
  0x9c   :  { %519 = vmatpush3.msk.msra.mxu0 %vm174_vm11, %v619_v40  ;;  %573 = vmatpush3.msk.msra.mxu1 %vm174_vm11, %v619_v40  ;;  %vm1267_vm11 = vcmp.eq.s32.totalorder %v847_v47, %v749_v37 }
  0x9d   :  { %v895_v51 = vpop.permute.xlu0 %144  ;;  %v897_v52 = vpop.permute.xlu1 %96 }
  0x9e   :  { %vm1246_vm12 = vcmp.eq.s32.totalorder %v895_v51, %v749_v37  ;;  %vm173_vm13 = vcmp.eq.s32.totalorder %v897_v52, %v749_v37  ;;  %vm1265_vm9 = vcmp.eq.s32.totalorder %v895_v51, %v749_v37 }
  0x9f   :  { %520 = vmatprep.subr.msk.mxu0 %vm1246_vm12, %v619_v40  ;;  %558 = vmatprep.subr.msk.mxu1 %vm1246_vm12, %v619_v40  ;;  %v453_v31 = vsel %vm173_vm13, 1.0, %v620_v9 }
  0xa0   :  { %521 = vmatpush3.msk.msra.mxu0 %vm173_vm13, %v619_v40  ;;  %574 = vmatpush3.msk.msra.mxu1 %vm173_vm13, %v619_v40  ;;  %vm1269_vm13 = vcmp.eq.s32.totalorder %v791_v43, %v749_v37  ;;  %v365_v43 = vld [vmem:[#allocation2] sm:$0x1] }
  0xa1   :  { %v919_v53 = vpop.permute.xlu0 %141  ;;  %v921_v54 = vpop.permute.xlu1 %93 }
  0xa2   :  { %vm1247_vm14 = vcmp.eq.s32.totalorder %v919_v53, %v749_v37  ;;  %vm172_vm15 = vcmp.eq.s32.totalorder %v921_v54, %v749_v37  ;;  %v457_v54 = vsel %vm177_vm5, 1.0, %v620_v9 }
  0xa3   :  { %522 = vmatprep.subr.msk.mxu0 %vm1247_vm14, %v619_v40  ;;  %559 = vmatprep.subr.msk.mxu1 %vm1247_vm14, %v619_v40  ;;  %v452_v29 = vsel %vm172_vm15, 1.0, %v620_v9 }
  0xa4   :  { %523 = vmatpush3.msk.msra.mxu0 %vm172_vm15, %v619_v40  ;;  %575 = vmatpush3.msk.msra.mxu1 %vm172_vm15, %v619_v40  ;;  %vm1271_vm15 = vcmp.eq.s32.totalorder %v751_v38, %v749_v37 }
  0xa5   :  { %v943_v55 = vpop.permute.xlu0 %138  ;;  %v945_v56 = vpop.permute.xlu1 %90 }
  0xa6   :  { %vm1248_vm0 = vcmp.eq.s32.totalorder %v943_v55, %v749_v37  ;;  %vm171_vm2 = vcmp.eq.s32.totalorder %v945_v56, %v749_v37 }
  0xa7   :  { %524 = vmatprep.subr.msk.mxu0 %vm1248_vm0, %v619_v40  ;;  %560 = vmatprep.subr.msk.mxu1 %vm1248_vm0, %v619_v40  ;;  %v451_v27 = vsel %vm171_vm2, 1.0, %v620_v9 }
  0xa8   :  { %525 = vmatpush3.msk.msra.mxu0 %vm171_vm2, %v619_v40  ;;  %576 = vmatpush3.msk.msra.mxu1 %vm171_vm2, %v619_v40  ;;  %vm1257_vm2 = vcmp.eq.s32.totalorder %v765_v41, %v749_v37 }
  0xa9   :  { %v967_v57 = vpop.permute.xlu0 %135  ;;  %v969_v58 = vpop.permute.xlu1 %87 }
  0xaa   :  { %vm1249_vm4 = vcmp.eq.s32.totalorder %v967_v57, %v749_v37  ;;  %vm170_vm6 = vcmp.eq.s32.totalorder %v969_v58, %v749_v37  ;;  %v459_v58 = vsel %vm1257_vm2, 1.0, %v620_v9 }
  0xab   :  { %526 = vmatprep.subr.msk.mxu0 %vm1249_vm4, %v619_v40  ;;  %561 = vmatprep.subr.msk.mxu1 %vm1249_vm4, %v619_v40  ;;  %v450_v25 = vsel %vm170_vm6, 1.0, %v620_v9 }
  0xac   :  { %527 = vmatpush3.msk.msra.mxu0 %vm170_vm6, %v619_v40  ;;  %577 = vmatpush3.msk.msra.mxu1 %vm170_vm6, %v619_v40  ;;  %vm1262_vm6 = vcmp.eq.s32.totalorder %v967_v57, %v749_v37 }
  0xad   :  { %v991_v59 = vpop.permute.xlu0 %132  ;;  %v993_v60 = vpop.permute.xlu1 %84 }
  0xae   :  { %vm1250_vm8 = vcmp.eq.s32.totalorder %v991_v59, %v749_v37  ;;  %vm169_vm10 = vcmp.eq.s32.totalorder %v993_v60, %v749_v37 }
  0xaf   :  { %528 = vmatprep.subr.msk.mxu0 %vm1250_vm8, %v619_v40  ;;  %562 = vmatprep.subr.msk.mxu1 %vm1250_vm8, %v619_v40  ;;  %v449_v23 = vsel %vm169_vm10, 1.0, %v620_v9 }
  0xb0   :  { %529 = vmatpush3.msk.msra.mxu0 %vm169_vm10, %v619_v40  ;;  %578 = vmatpush3.msk.msra.mxu1 %vm169_vm10, %v619_v40  ;;  %vm1266_vm10 = vcmp.eq.s32.totalorder %v871_v49, %v749_v37 }
  0xb1   :  { %v1015_v61 = vpop.permute.xlu0 %129  ;;  %v82_v62 = vpop.permute.xlu1 %81 }
  0xb2   :  { %vm1251_vm12 = vcmp.eq.s32.totalorder %v1015_v61, %v749_v37  ;;  %vm168_vm14 = vcmp.eq.s32.totalorder %v82_v62, %v749_v37  ;;  %vm1260_vm5 = vcmp.eq.s32.totalorder %v1015_v61, %v749_v37 }
  0xb3   :  { %530 = vmatprep.subr.msk.mxu0 %vm1251_vm12, %v619_v40  ;;  %563 = vmatprep.subr.msk.mxu1 %vm1251_vm12, %v619_v40  ;;  %v448_v21 = vsel %vm168_vm14, 1.0, %v620_v9 }
  0xb4   :  { %531 = vmatpush3.msk.msra.mxu0 %vm168_vm14, %v619_v40  ;;  %579 = vmatpush3.msk.msra.mxu1 %vm168_vm14, %v619_v40  ;;  %vm1270_vm14 = vcmp.eq.s32.totalorder %v753_v39, %v749_v37  ;;  %v260_v39 = vld [vmem:[#allocation5] sm:$0xff] }
  0xb5   :  { %v1034_v63 = vpop.permute.xlu0 %126  ;;  %v79_v0 = vpop.permute.xlu1 %78 }
  0xb6   :  { %vm1252_vm0 = vcmp.eq.s32.totalorder %v1034_v63, %v749_v37  ;;  %vm167_vm4 = vcmp.eq.s32.totalorder %v79_v0, %v749_v37 }
  0xb7   :  { %532 = vmatprep.subr.msk.mxu0 %vm1252_vm0, %v619_v40  ;;  %564 = vmatprep.subr.msk.mxu1 %vm1252_vm0, %v619_v40  ;;  %v447_v19 = vsel %vm167_vm4, 1.0, %v620_v9 }
  0xb8   :  { %533 = vmatpush3.msk.msra.mxu0 %vm167_vm4, %v619_v40  ;;  %580 = vmatpush3.msk.msra.mxu1 %vm167_vm4, %v619_v40  ;;  %vm1259_vm4 = vcmp.eq.s32.totalorder %v1034_v63, %v749_v37 }
  0xb9   :  { %v1053_v1 = vpop.permute.xlu0 %123  ;;  %v76_v2 = vpop.permute.xlu1 %75  ;;  %v463_v41 = vsel %vm1259_vm4, 1.0, %v620_v9 }
  0xba   :  { %vm1254_vm8 = vcmp.eq.s32.totalorder %v1053_v1, %v749_v37  ;;  %vm166_vm12 = vcmp.eq.s32.totalorder %v76_v2, %v749_v37 }
  0xbb   :  { %534 = vmatprep.subr.msk.mxu0 %vm1254_vm8, %v619_v40  ;;  %565 = vmatprep.subr.msk.mxu1 %vm1254_vm8, %v619_v40  ;;  %v446_v15 = vsel %vm166_vm12, 1.0, %v620_v9 }
  0xbc   :  { %535 = vmatpush3.msk.msra.mxu0 %vm166_vm12, %v619_v40  ;;  %581 = vmatpush3.msk.msra.mxu1 %vm166_vm12, %v619_v40  ;;  %vm1268_vm12 = vcmp.eq.s32.totalorder %v823_v45, %v749_v37 }
  0xbd   :  { %v1072_v3 = vpop.permute.xlu0 %120  ;;  %v73_v4 = vpop.permute.xlu1 %72 }
  0xbe   :  { %vm181_vm0 = vcmp.eq.s32.totalorder %v1072_v3, %v749_v37  ;;  %vm165_vm1 = vcmp.eq.s32.totalorder %v73_v4, %v749_v37 }
  0xbf   :  { %536 = vmatprep.subr.msk.mxu0 %vm181_vm0, %v619_v40  ;;  %566 = vmatprep.subr.msk.mxu1 %vm181_vm0, %v619_v40  ;;  %v445_v10 = vsel %vm165_vm1, 1.0, %v620_v9  ;;  %v461_v44 = vsel %vm181_vm0, 1.0, %v620_v9  ;;  %vm1261_vm0 = vcmp.eq.s32.totalorder %v991_v59, %v749_v37 }
  0xc0   :  { %537 = vmatpush3.msk.msra.mxu0 %vm165_vm1, %v619_v40  ;;  %582 = vmatpush3.msk.msra.mxu1 %vm165_vm1, %v619_v40  ;;  %vm1256_vm1 = vcmp.eq.s32.totalorder %v767_v42, %v749_v37 }
  0xc1   :  { %v118_v5 = vpop.permute.xlu0 %117  ;;  %v70_v6 = vpop.permute.xlu1 %69  ;;  %v458_v56 = vsel %vm1256_vm1, 1.0, %v620_v9 }
  0xc2   :  { %vm180_vm8 = vcmp.eq.s32.totalorder %v118_v5, %v749_v37  ;;  %vm164_vm3 = vcmp.eq.s32.totalorder %v70_v6, %v749_v37  ;;  %v464_v5 = vsel %vm1260_vm5, 1.0, %v620_v9  ;;  %v465_v6 = vsel %vm1261_vm0, 1.0, %v620_v9 }
  0xc3   :  { %v444_v11 = vsel %vm164_vm3, 1.0, %v620_v9  ;;  %538 = vmatprep.subr.msk.mxu0 %vm180_vm8, %v619_v40  ;;  %567 = vmatprep.subr.msk.mxu1 %vm180_vm8, %v619_v40  ;;  %v460_v60 = vsel %vm180_vm8, 1.0, %v620_v9  ;;  %vm1264_vm8 = vcmp.eq.s32.totalorder %v919_v53, %v749_v37 }
  0xc4   :  { %v366_v14 = vadd.f32 %v445_v10, %v444_v11  ;;  %539 = vmatpush3.msk.msra.mxu0 %vm164_vm3, %v619_v40  ;;  %583 = vmatpush3.msk.msra.mxu1 %vm164_vm3, %v619_v40  ;;  %v456_v40 = vsel %vm176_vm7, 1.0, %v620_v9  ;;  %vm1258_vm3 = vcmp.eq.s32.totalorder %v1053_v1, %v749_v37  ;;  %vm1263_vm7 = vcmp.eq.s32.totalorder %v943_v55, %v749_v37 }
  0xc5   :  { %337 = vmatmul.mubr.f32.vlgmr.msra.gmra.mxu0 %v264_v7  ;;  %347 = vmatmul.mubr.f32.vlgmr.msra.gmra.mxu1 %v268_v8  ;;  %v462_v42 = vsel %vm1258_vm3, 1.0, %v620_v9  ;;  %v466_v7 = vsel %vm1262_vm6, 1.0, %v620_v9  ;;  %v467_v8 = vsel %vm1263_vm7, 1.0, %v620_v9  ;;  %v468_v10 = vsel %vm1264_vm8, 1.0, %v620_v9 }
  0xc6   :  { %v367_v16 = vadd.f32 %v446_v15, %v366_v14  ;;  %341 = vmatprep.mubr.f32.mxu0 %v267_v12  ;;  %351 = vmatprep.mubr.f32.mxu1 %v271_v13  ;;  %v469_v11 = vsel %vm1265_vm9, 1.0, %v620_v9  ;;  %v470_v12 = vsel %vm1266_vm10, 1.0, %v620_v9  ;;  %v471_v13 = vsel %vm1267_vm11, 1.0, %v620_v9 }
  0xc7   :  { %v472_v14 = vsel %vm1268_vm12, 1.0, %v620_v9  ;;  %v473_v15 = vsel %vm1269_vm13, 1.0, %v620_v9 }
  0xc8   :  { %v368_v20 = vadd.f32 %v447_v19, %v367_v16  ;;  %v474_v16 = vsel %vm1270_vm14, 1.0, %v620_v9 }
  0xc9   :  { %342 = vmatmul.mubr.f32.gmra.mxu0 %v266_v17  ;;  %352 = vmatmul.mubr.f32.gmra.mxu1 %v270_v18  ;;  %v475_v17 = vsel %vm1271_vm15, 1.0, %v620_v9 }
  0xca   :  { %v369_v22 = vadd.f32 %v448_v21, %v368_v20 }
  0xcc   :  { %v370_v24 = vadd.f32 %v449_v23, %v369_v22 }
  0xce   :  { %v371_v26 = vadd.f32 %v450_v25, %v370_v24 }
  0xd0   :  { %v372_v28 = vadd.f32 %v451_v27, %v371_v26 }
  0xd2   :  { %v373_v30 = vadd.f32 %v452_v29, %v372_v28  ;;  %v262_v28 = vld [vmem:[#allocation5 + $0x10] sm:$0xff] }
  0xd4   :  { %v374_v32 = vadd.f32 %v453_v31, %v373_v30 }
  0xd6   :  { %v375_v34 = vadd.f32 %v454_v33, %v374_v32  ;;  %v261_v33 = vld [vmem:[#allocation5 + $0x8] sm:$0xff] }
  0xd8   :  { %v376_v36 = vadd.f32 %v455_v35, %v375_v34  ;;  %v263_v35 = vld [vmem:[#allocation5 + $0x18] sm:$0xff] }
  0xda   :  { %v377_v52 = vadd.f32 %v456_v40, %v376_v36 }
  0xdc   :  { %v378_v50 = vadd.f32 %v457_v54, %v377_v52 }
  0xde   :  { %v379_v48 = vadd.f32 %v458_v56, %v378_v50 }
  0xe0   :  { %v380_v46 = vadd.f32 %v459_v58, %v379_v48 }
  0xe2   :  { %v381_v62 = vadd.f32 %v460_v60, %v380_v46 }
  0xe4   :  { %v382_v0 = vadd.f32 %v461_v44, %v381_v62 }
  0xe6   :  { %v383_v2 = vadd.f32 %v462_v42, %v382_v0 }
  0xe8   :  { %v384_v4 = vadd.f32 %v463_v41, %v383_v2 }
  0xea   :  { %v385_v3 = vadd.f32 %v464_v5, %v384_v4 }
  0xec   :  { %v386_v1 = vadd.f32 %v465_v6, %v385_v3 }
  0xee   :  { %v387_v63 = vadd.f32 %v466_v7, %v386_v1 }
  0xf0   :  { %v388_v61 = vadd.f32 %v467_v8, %v387_v63 }
  0xf2   :  { %v389_v59 = vadd.f32 %v468_v10, %v388_v61 }
  0xf4   :  { %v390_v57 = vadd.f32 %v469_v11, %v389_v59 }
  0xf6   :  { %v391_v55 = vadd.f32 %v470_v12, %v390_v57 }
  0xf8   :  { %v392_v53 = vadd.f32 %v471_v13, %v391_v55 }
  0xfa   :  { %v393_v51 = vadd.f32 %v472_v14, %v392_v53 }
  0xfc   :  { %v394_v49 = vadd.f32 %v473_v15, %v393_v51 }
  0xfe   :  { %v395_v47 = vadd.f32 %v474_v16, %v394_v49 }
 0x100   :  { %v396_v45 = vadd.f32 %v475_v17, %v395_v47 }
 0x102   :  { %v397_v18 = vrot.slane %v396_v45, 4 }
 0x104   :  { %v398_v19 = vadd.f32 %v397_v18, %v396_v45 }
 0x106   :  { %v399_v20 = vrot.slane %v398_v19, 2 }
 0x108   :  { %v400_v21 = vadd.f32 %v399_v20, %v398_v19 }
 0x10a   :  { %v401_v22 = vrot.slane %v400_v21, 1 }
 0x10c   :  { %v402_v23 = vadd.f32 %v401_v22, %v400_v21 }
 0x10e   :  { %v403_v24 = vadd.f32 %v402_v23, %v365_v43 }
 0x110   :  { %404 = vst [vmem:[#allocation2] sm:$0x1] %v403_v24 }
 0x185   :  { %v540_v25 = vpop.f32.mrf.mxu0  ;;  %v546_v26 = vpop.f32.mrf.mxu1 }
 0x187   :  { %v541_v27 = vpop.f32.mrf.mxu0  ;;  %v547_v29 = vpop.f32.mrf.mxu1 }
 0x188   :  { %v542_v30 = vadd.f32 %v541_v27, %v540_v25  ;;  %v548_v31 = vadd.f32 %v547_v29, %v546_v26 }
 0x189   :  { %v543_v37 = vpop.f32.mrf.mxu0  ;;  %v549_v38 = vpop.f32.mrf.mxu1 }
 0x18a   :  { %v357_v9 = vadd.f32 %v542_v30, %v260_v39  ;;  %v359_v32 = vadd.f32 %v548_v31, %v262_v28 }
 0x18b   :  { %v544_v34 = vpop.f32.mrf.mxu0  ;;  %v550_v36 = vpop.f32.mrf.mxu1 }
 0x18c   :  { %361 = vst [vmem:[#allocation5] sm:$0xff] %v357_v9  ;;  %363 = vst [vmem:[#allocation5 + $0x10] sm:$0xff] %v359_v32  ;;  %v545_v40 = vadd.f32 %v544_v34, %v543_v37  ;;  %v551_v52 = vadd.f32 %v550_v36, %v549_v38 }
 0x18e   :  { %v358_v54 = vadd.f32 %v545_v40, %v261_v33  ;;  %v360_v50 = vadd.f32 %v551_v52, %v263_v35 }
 0x190   :  { %362 = vst [vmem:[#allocation5 + $0x8] sm:$0xff] %v358_v54  ;;  %364 = vst [vmem:[#allocation5 + $0x18] sm:$0xff] %v360_v50 }
 0x191 PF:  { %v414_v48 = vlaneseq  ;;  %s621_s2 = smov [#allocation5]  }
 0x192   :  { %s432_s9 = sshll.u32 %s621_s2, 4  ;;  %s433_s9 = int_to_ptr.vmem [resolvable:$true] %s432_s9 }
 0x193   :  { %v408_v56 = vld [vmem:[#allocation2] sm:$0x1]  ;;  %v415_v46 = vshrl.u32 %v414_v48, 7  ;;  %v410_v44 = vld [vmem:[#allocation5] sm:$0xff]  ;;  %v412_v42 = vld [vmem:[#allocation5 + $0x10] sm:$0xff]  ;;  %s595_s10 = scalar_lea.vmem %s433_s9, 512  ;;  %p600_p2 = scmp.lt.s32.totalorder %s433_s9, %s433_s9 }
 0x194   :  { %v409_v58 = vmax.f32 %v408_v56, 1.0  ;;  %p596_p1 = scmp.ne.s32.totalorder %s433_s9, %s595_s10  ;;  %p601_p3 = scmp.lt.s32.totalorder %s595_s10, %s595_s10 }
 0x195   :  { %v416_v60 = vsub.s32 0, %v415_v46 }
 0x196   :  { %p602_p4 = por %p601_p3, %p600_p2 }
 0x197   :  { %v417_v62 = vrot.slane %v409_v58, %v416_v60  ;;  %v411_v0 = vld [vmem:[#allocation5 + $0x8] sm:$0xff]  ;;  %v413_v2 = vld [vmem:[#allocation5 + $0x18] sm:$0xff] }
 0x198   :  { %p603_p5 = pnand %p602_p4, %p596_p1 }
 0x199   :  { %593 = vrcp.f32 %v417_v62 }
 0x1a6   :  { %v594_v41 = vpop.eup %593 }
 0x1a7   :  { %v419_v4 = vmul.f32 %v594_v41, %v410_v44  ;;  %v420_v5 = vmul.f32 %v594_v41, %v411_v0  ;;  %v421_v3 = vmul.f32 %v594_v41, %v412_v42  ;;  %v422_v6 = vmul.f32 %v594_v41, %v413_v2 }
 0x1a9   :  { %423 = vst [vmem:[#allocation5] sm:$0xff] %v419_v4  ;;  %424 = vst [vmem:[#allocation5 + $0x8] sm:$0xff] %v420_v5 }
 0x1aa   :  { %425 = vst [vmem:[#allocation5 + $0x10] sm:$0xff] %v421_v3  ;;  %426 = vst [vmem:[#allocation5 + $0x18] sm:$0xff] %v422_v6 }
 0x1ab   :  { %606 = shalt.err (!%p603_p5)
}
 0x1ac   :  { %s622_s11 = smov 128   ;;  %s623_s12 = smov 8  }
 0x1ad   :  { %438 = dma.vmem_to_hbm [thread:$0]  %s433_s9, 512, %s1239_s3, [#allocation6], %s622_s11, %s622_s11, %s623_s12  }
 0x1ae   :  { %615 = dma.done.wait [#allocation6], 512  }
 0x1af   :  { %616 = vsyncadd [#allocation6], 4294966784 }
 0x1b0   :  { %442 = vsyncpa [#allocation6], 1 }

</bundles_post_ra>
